<compile_context>
chip_gen: v6e
topology: v6e:2x2x1
jax: 0.10.0
libtpu: 0.0.40
codegen_flags: <defaults>
</compile_context>

<pallas_src>
import functools
import math

import jax
import jax.numpy as jnp
from jax.experimental import pallas as pl
from jax.experimental.pallas import tpu as pltpu


def _eca_kernel(w_ref, x_ref, o_ref, *, kernel_size):
    # w_ref: (k,) f32 conv taps in SMEM.
    # x_ref / o_ref: (TB, C, HW) blocks in VMEM (lane dim = HW).
    tb, C, hw = x_ref.shape
    pad = kernel_size // 2

    xv = x_ref[...]  # single VMEM load, reused for pooling and the final multiply

    # AdaptiveAvgPool2d(1): mean over the lane-dense spatial axis, f32 accumulation.
    pooled = jnp.sum(xv, axis=-1, dtype=jnp.float32) * jnp.float32(1.0 / hw)  # (TB, C)

    # Conv1d(1->1, k, padding=k//2, bias=False) over the channel axis, expressed as
    # k shifted adds on the zero-padded pooled vector (cross-correlation == PyTorch):
    #   y[c] = sum_j w[j] * pooled[c + j - pad]
    if pad > 0:
        zpad = jnp.zeros((tb, pad), jnp.float32)
        padded = jnp.concatenate([zpad, pooled, zpad], axis=1)       # (TB, C + 2*pad)
    else:
        padded = pooled
    y = jnp.zeros((tb, C), jnp.float32)
    for j in range(kernel_size):                                     # static unroll, k is tiny
        y = y + w_ref[j] * jax.lax.slice_in_dim(padded, j, j + C, axis=1)

    scale = jax.nn.sigmoid(y).astype(xv.dtype)                       # (TB, C)
    o_ref[...] = (xv * scale[:, :, None]).astype(o_ref.dtype)


def eca_forward(x, conv_w, *, block_bytes_budget=4 << 20):
    """x: (B, C, H, W); conv_w: (1, 1, k) Conv1d weight (no bias)."""
    B, C, H, W = x.shape
    k = int(conv_w.shape[-1])
    hw = H * W

    x3 = x.reshape(B, C, hw)                       # lane-dense layout
    taps = conv_w.reshape(-1).astype(jnp.float32)  # (k,) -> SMEM

    # Batch as many images per grid step as fit the block budget (divisor of B so
    # every block is full; per-step overhead is amortized over a multi-MiB block).
    per_image_bytes = C * hw * x.dtype.itemsize
    tb = 1
    for d in range(1, B + 1):
        if B % d == 0 and d * per_image_bytes <= block_bytes_budget:
            tb = d
    block_bytes = tb * per_image_bytes
    # in + out blocks, each double-buffered by the pipeline, plus slack.
    needed = 4 * block_bytes + (2 << 20)
    vmem_limit = int(min(needed, 64 << 20)) if needed > (16 << 20) else None
    # TODO(synk): if a single image (C*H*W) ever exceeds the VMEM budget, switch to a
    # two-pass spatially-tiled variant (pool-sum pass over HW tiles, then scale pass).

    out3 = pl.pallas_call(
        functools.partial(_eca_kernel, kernel_size=k),
        out_shape=jax.ShapeDtypeStruct((B, C, hw), x.dtype),
        grid_spec=pltpu.PrefetchScalarGridSpec(
            num_scalar_prefetch=0,
            grid=(B // tb,),
            in_specs=[
                pl.BlockSpec(memory_space=pltpu.MemorySpace.SMEM),    # k conv taps
                pl.BlockSpec((tb, C, hw), lambda b: (b, 0, 0)),       # x block
            ],
            out_specs=pl.BlockSpec((tb, C, hw), lambda b: (b, 0, 0)),
        ),
        compiler_params=pltpu.CompilerParams(
            dimension_semantics=("parallel",),
            vmem_limit_bytes=vmem_limit,
        ),
    )(taps, x3)
    return out3.reshape(B, C, H, W)


def eca_reference(x, conv_w):
    """Pure-JAX reference matching the PyTorch module semantics."""
    B, C, H, W = x.shape
    k = conv_w.shape[-1]
    pad = k // 2
    pooled = jnp.mean(x.astype(jnp.float32), axis=(2, 3))            # (B, C)
    padded = jnp.pad(pooled, ((0, 0), (pad, pad)))                    # (B, C + 2*pad)
    w = conv_w.reshape(-1).astype(jnp.float32)
    y = sum(w[j] * padded[:, j:j + C] for j in range(k))              # (B, C) cross-correlation
    scale = jax.nn.sigmoid(y)
    return (x.astype(jnp.float32) * scale[:, :, None, None]).astype(x.dtype)


if __name__ == "__main__":
    B, C, H, W = 2, 16, 16, 16

    # Same kernel-size rule as the PyTorch module (gamma=2, b=1).
    gamma, b = 2, 1
    kk = int(abs((math.log(C, 2) + b) / gamma))
    kernel_size = kk if kk % 2 else kk + 1   # C=16 -> kernel_size=3, padding=1

    key = jax.random.PRNGKey(0)
    kx, kw = jax.random.split(key)
    x = jax.random.normal(kx, (B, C, H, W), dtype=jnp.float32)

    # Deterministic Conv1d weight init (kaiming-uniform-like bound), shape (1, 1, k).
    bound = 1.0 / math.sqrt(kernel_size)
    conv_w = jax.random.uniform(
        kw, (1, 1, kernel_size), minval=-bound, maxval=bound, dtype=jnp.float32
    )

    out = eca_forward(x, conv_w)
    out = jax.block_until_ready(out)

    ref = eca_reference(x, conv_w)
    assert out.shape == x.shape and out.dtype == x.dtype
    assert jnp.allclose(out, ref, atol=1e-5, rtol=1e-5), "mismatch vs reference"

    print("KERNEL_OK")
</pallas_src>

<mosaic_0001>
module attributes {stable_mosaic.version = 11 : i64} {
  func.func @_eca_kernel(%arg0: i32, %arg1: memref<3xf32, #tpu.memory_space<smem>>, %arg2: memref<2x16x256xf32, #tpu.memory_space<vmem>>, %arg3: memref<2x16x256xf32, #tpu.memory_space<vmem>>) attributes {dimension_semantics = [#tpu.dimension_semantics<parallel>], iteration_bounds = array<i64: 1>, scalar_prefetch = 0 : i64, scratch_operands = 0 : i64, tpu.core_type = #tpu.core_type<tc>, window_params = [{transform_indices = @transform_0, window_bounds = array<i64: 3>}, {transform_indices = @transform_1, window_bounds = array<i64: 2, 16, 256>}, {transform_indices = @transform_2, window_bounds = array<i64: 2, 16, 256>}]} {
    %c0 = arith.constant 0 : index
    %c0_0 = arith.constant 0 : index
    %c0_1 = arith.constant 0 : index
    %0 = vector.load %arg2[%c0, %c0_0, %c0_1] : memref<2x16x256xf32, #tpu.memory_space<vmem>>, vector<2x16x256xf32>
    %cst = arith.constant dense<0.000000e+00> : vector<2x16xf32>
    %1 = vector.multi_reduction <add>, %0, %cst [2] : vector<2x16x256xf32> to vector<2x16xf32>
    %cst_2 = arith.constant 3.906250e-03 : f32
    %2 = vector.broadcast %cst_2 : f32 to vector<2x16xf32>
    %3 = arith.mulf %1, %2 : vector<2x16xf32>
    %cst_3 = arith.constant 0.000000e+00 : f32
    %4 = vector.broadcast %cst_3 : f32 to vector<2x1xf32>
    %5 = tpu.concatenate %4, %3, %4 in 1 : vector<2x1xf32>, vector<2x16xf32>, vector<2x1xf32> -> vector<2x18xf32>
    %cst_4 = arith.constant 0.000000e+00 : f32
    %6 = vector.broadcast %cst_4 : f32 to vector<2x16xf32>
    %c0_5 = arith.constant 0 : index
    %7 = memref.load %arg1[%c0_5] : memref<3xf32, #tpu.memory_space<smem>>
    %8 = vector.extract_strided_slice %5 {offsets = [0, 0], sizes = [2, 16], strides = [1, 1]} : vector<2x18xf32> to vector<2x16xf32>
    %9 = vector.broadcast %7 : f32 to vector<2x16xf32>
    %10 = arith.mulf %9, %8 : vector<2x16xf32>
    %11 = arith.addf %6, %10 : vector<2x16xf32>
    %c1 = arith.constant 1 : index
    %12 = memref.load %arg1[%c1] : memref<3xf32, #tpu.memory_space<smem>>
    %13 = vector.extract_strided_slice %5 {offsets = [0, 1], sizes = [2, 16], strides = [1, 1]} : vector<2x18xf32> to vector<2x16xf32>
    %14 = vector.broadcast %12 : f32 to vector<2x16xf32>
    %15 = arith.mulf %14, %13 : vector<2x16xf32>
    %16 = arith.addf %11, %15 : vector<2x16xf32>
    %c2 = arith.constant 2 : index
    %17 = memref.load %arg1[%c2] : memref<3xf32, #tpu.memory_space<smem>>
    %18 = vector.extract_strided_slice %5 {offsets = [0, 2], sizes = [2, 16], strides = [1, 1]} : vector<2x18xf32> to vector<2x16xf32>
    %19 = vector.broadcast %17 : f32 to vector<2x16xf32>
    %20 = arith.mulf %19, %18 : vector<2x16xf32>
    %21 = arith.addf %16, %20 : vector<2x16xf32>
    %22 = arith.negf %21 : vector<2x16xf32>
    %23 = math.exp %22 : vector<2x16xf32>
    %cst_6 = arith.constant 1.000000e+00 : f32
    %24 = vector.broadcast %cst_6 : f32 to vector<2x16xf32>
    %25 = arith.addf %24, %23 : vector<2x16xf32>
    %26 = arith.divf %24, %25 : vector<2x16xf32>
    %27 = vector.shape_cast %26 : vector<2x16xf32> to vector<2x16x1xf32>
    %28 = vector.broadcast %27 : vector<2x16x1xf32> to vector<2x16x256xf32>
    %29 = arith.mulf %0, %28 : vector<2x16x256xf32>
    %c0_7 = arith.constant 0 : index
    %c0_8 = arith.constant 0 : index
    %c0_9 = arith.constant 0 : index
    %30 = vector.load %arg3[%c0_7, %c0_8, %c0_9] : memref<2x16x256xf32, #tpu.memory_space<vmem>>, vector<2x16x256xf32>
    tpu.vector_store %arg3[%c0_7, %c0_8, %c0_9], %29 {strides = array<i32>} : memref<2x16x256xf32, #tpu.memory_space<vmem>>, vector<2x16x256xf32>,
    return
  }
  func.func @transform_0(%arg0: i32) -> i32 {
    %c0_i32 = arith.constant 0 : i32
    %c0_i32_0 = arith.constant 0 : i32
    return %c0_i32 : i32
  }
  func.func @transform_1(%arg0: i32) -> (i32, i32, i32) {
    %c0_i32 = arith.constant 0 : i32
    %c0_i32_0 = arith.constant 0 : i32
    %c0_i32_1 = arith.constant 0 : i32
    return %arg0, %c0_i32, %c0_i32_0 : i32, i32, i32
  }
  func.func @transform_2(%arg0: i32) -> (i32, i32, i32) {
    %c0_i32 = arith.constant 0 : i32
    %c0_i32_0 = arith.constant 0 : i32
    %c0_i32_1 = arith.constant 0 : i32
    return %arg0, %c0_i32, %c0_i32_0 : i32, i32, i32
  }
}

</mosaic_0001>

<bundles_post_ra>
// kernel: tpu_custom_call.1
= control target key start
LH: loop header
LB: loop body
LE: loop exit
PB: predicated region body
PF: predicated region fallthrough
CT: control target
= control target key end

     0   :  { %7 = vsyncpa [#allocation5], 0  ;;  %s314_s0 = inlined_call_operand.hbm [shape: f32[3], index: 0, kind: input, shape index: {}]   ;;  %s315_s1 = inlined_call_operand.hbm [shape: f32[2,16,256], index: 1, kind: input, shape index: {}]   ;;  %s316_s2 = inlined_call_operand.hbm [shape: f32[2,16,256], index: 2, kind: output, shape index: {}]  }
   0x1   :  { %8 = vsyncpa [#allocation3], 0 }
   0x2   :  { %9 = vsyncpa [#allocation4], 0  ;;  %s245_s9 = smov [#allocation2]   ;;  %s246_s12 = smov [#allocation6]  }
   0x3   :  { %17 = dma.hbm_to_smem %s314_s0, 16, %s245_s9, [#allocation5]  }
   0x4   :  { %s23_s13 = sshll.u32 %s246_s12, 4  ;;  %s24_s13 = int_to_ptr.vmem [resolvable:$true] %s23_s13 }
   0x5   :  { %s207_s14 = scalar_lea.vmem %s24_s13, 1024  ;;  %p212_p1 = scmp.lt.s32.totalorder %s24_s13, %s24_s13 }
   0x6   :  { %p208_p0 = scmp.ne.s32.totalorder %s24_s13, %s207_s14  ;;  %p213_p2 = scmp.lt.s32.totalorder %s207_s14, %s207_s14 }
   0x8   :  { %p214_p3 = por %p213_p2, %p212_p1 }
   0xa   :  { %p215_p4 = pnand %p214_p3, %p208_p0 }
   0xc   :  { %218 = shalt.err (!%p215_p4)
}
   0xd   :  { %s247_s15 = smov 256   ;;  %s248_s16 = smov 16  }
   0xe   :  { %29 = dma.hbm_to_vmem [thread:$0]  %s315_s1, 1024, %s24_s13, [#allocation3], %s247_s15, %s247_s15, %s248_s16  }
   0xf   :  { %239 = dma.done.wait [#allocation5], 16  }
  0x10   :  { %240 = vsyncadd [#allocation5], 4294967280 }
  0x11   :  { %241 = dma.done.wait [#allocation3], 1024  }
  0x12   :  { %242 = vsyncadd [#allocation3], 4294966272 }
  0x13   :  { %36 = sfence }
  0x14   :  { %v276_v0 = vld [vmem:[#allocation6 + $0x20] sm:$0xff]  ;;  %v278_v1 = vld [vmem:[#allocation6 + $0x28] sm:$0xff]  ;;  %v286_v5 = vld [vmem:[#allocation6 + $0x30] sm:$0xff]  ;;  %v65_v12 = vlaneseq  ;;  %s178_s0 = sld [smem:[#allocation2 + $0x2]]  ;;  %vm77_vm0 = vcmask 138312   ;;  %vm88_vm1 = vcmask 1041409  }
  0x15   :  { %v280_v2 = vld [vmem:[#allocation6] sm:$0xff]  ;;  %v51_v3 = vadd.f32 %v278_v1, %v276_v0  ;;  %v284_v4 = vld [vmem:[#allocation6 + $0x8] sm:$0xff]  ;;  %v288_v6 = vld [vmem:[#allocation6 + $0x38] sm:$0xff]  ;;  %s177_s1 = sld [smem:[#allocation2 + $0x1]]  ;;  %vm91_vm2 = vcmask 7168   ;;  %vm93_vm3 = vcmask 138240  }
  0x16   :  { %v45_v7 = vadd.f32 %v284_v4, %v280_v2  ;;  %v292_v8 = vld [vmem:[#allocation6 + $0x10] sm:$0xff]  ;;  %v294_v9 = vld [vmem:[#allocation6 + $0x18] sm:$0xff]  ;;  %v54_v10 = vadd.f32 %v288_v6, %v286_v5  ;;  %v66_v13 = vand.u32 127, %v65_v12  ;;  %v69_v15 = vshrl.u32 %v65_v12, 7  ;;  %s249_s19 = smov 126   ;;  %s250_s20 = smov 127  }
  0x17   :  { %52 = vadd.xlane.f32.xlu1 %v51_v3  ;;  %v48_v11 = vadd.f32 %v294_v9, %v292_v8  ;;  %s95_s21 = sld [smem:[#allocation2]]  ;;  %s251_s22 = smov [#allocation7]  }
  0x18   :  { %46 = vadd.xlane.f32.xlu0 %v45_v7  ;;  %v67_v14 = vadd.s32 4294967295, %v66_v13  ;;  %v72_v16 = vadd.s32 4294967287, %v66_v13  ;;  %v134_v49 = vsub.s32 1, %v69_v15  ;;  %v123_v50 = vsub.s32 0, %v69_v15  ;;  %s164_s23 = sshll.u32 %s251_s22, 4  ;;  %s165_s23 = int_to_ptr.vmem [resolvable:$true] %s164_s23 }
  0x19   :  { %s219_s24 = scalar_lea.vmem %s165_s23, 1024  ;;  %p224_p6 = scmp.lt.s32.totalorder %s165_s23, %s165_s23 }
  0x1a   :  { %v70_v19 = vsub.s32 %v67_v14, %v69_v15  ;;  %v75_v21 = vsub.s32 %v72_v16, %v69_v15  ;;  %v108_v34 = vstv %s178_s0  ;;  %p220_p5 = scmp.ne.s32.totalorder %s165_s23, %s219_s24  ;;  %p225_p7 = scmp.lt.s32.totalorder %s219_s24, %s219_s24 }
  0x1b   :  { %55 = vadd.xlane.f32.xlu1 %v54_v10  ;;  %v100_v35 = vstv %s177_s1 }
  0x1c   :  { %49 = vadd.xlane.f32.xlu0 %v48_v11  ;;  %p226_p8 = por %p225_p7, %p224_p6 }
  0x1d   :  { %v96_v40 = vstv %s95_s21 }
  0x1e   :  { %p227_p9 = pnand %p226_p8, %p220_p5 }
  0xa0   :  { %v53_v17 = vpop.xlane.xlu1 %52 }
  0xa1   :  { %v47_v18 = vpop.xlane.xlu0 %46  ;;  %v59_v20 = vmul.f32 0.00390625, %v53_v17 }
  0xa2   :  { %v57_v22 = vmul.f32 0.00390625, %v47_v18 }
  0xa3   :  { %v82_v27 = vrot.slane %v59_v20, %v70_v19 }
  0xa4   :  { %v56_v23 = vpop.xlane.xlu1 %55  ;;  %v71_v29 = vrot.slane %v57_v22, %v70_v19 }
  0xa5   :  { %v60_v24 = vmul.f32 0.00390625, %v56_v23  ;;  %v50_v25 = vpop.xlane.xlu0 %49 }
  0xa6   :  { %v58_v26 = vmul.f32 0.00390625, %v50_v25 }
  0xa7   :  { %v86_v28 = vrot.slane %v60_v24, %v75_v21 }
  0xa8   :  { %v76_v30 = vrot.slane %v58_v26, %v75_v21 }
  0xa9   :  { %v87_v31 = vsel %vm77_vm0, %v86_v28, %v82_v27 }
  0xaa   :  { %v78_v32 = vsel %vm77_vm0, %v76_v30, %v71_v29 }
  0xab   :  { %v89_v33 = vsel %vm88_vm1, %v87_v31, %v78_v32 }
  0xac   :  { %v92_v36 = vsel %vm91_vm2, 0.0, %v89_v33 }
  0xad   :  { %v94_v37 = vsel %vm93_vm3, %v92_v36, 0.0 }
  0xae   :  { %v109_v38 = vmul.f32 %v108_v34, %v94_v37  ;;  %v101_v39 = vmul.f32 %v100_v35, %v94_v37  ;;  %v97_v41 = vmul.f32 %v96_v40, %v94_v37 }
  0xb0   :  { %111 = vrot.lane.b32.xlu1 %v109_v38, %s249_s19  ;;  %103 = vrot.lane.b32.xlu0 %v101_v39, %s250_s20 }
 0x122   :  { %v104_v42 = vpop.permute.xlu0 %103  ;;  %v112_v44 = vpop.permute.xlu1 %111 }
 0x123   :  { %v106_v43 = vadd.f32 %v104_v42, %v97_v41 }
 0x125   :  { %v114_v45 = vadd.f32 %v112_v44, %v106_v43 }
 0x127   :  { %v179_v46 = vmul.f32 -1.442695, %v114_v45 }
 0x129   :  { %187 = vpow2.f32 %v179_v46 }
 0x136   :  { %v188_v47 = vpop.eup %187 }
 0x137   :  { %v118_v48 = vadd.f32 1.0, %v188_v47 }
 0x139   :  { %189 = vrcp.f32 %v118_v48 }
 0x146   :  { %v190_v51 = vpop.eup %189 }
 0x147   :  { %v135_v52 = vrot.slane %v190_v51, %v134_v49  ;;  %v124_v53 = vrot.slane %v190_v51, %v123_v50 }
 0x149   :  { %137 = vbcast.lane.b32.xlu0 %v135_v52, 256  ;;  %126 = vbcast.lane.b32.xlu1 %v124_v53, 256 }
 0x14d   :  { %130 = vbcast.lane.b32.xlu1 %v124_v53, 264 }
 0x151   :  { %141 = vbcast.lane.b32.xlu1 %v135_v52, 264 }
 0x1bb   :  { %v138_v54 = vpop.permute.xlu0 %137  ;;  %v127_v55 = vpop.permute.xlu1 %126 }
 0x1bc   :  { %v147_v56 = vmul.f32 %v138_v54, %v276_v0  ;;  %v148_v57 = vmul.f32 %v138_v54, %v278_v1  ;;  %v143_v58 = vmul.f32 %v127_v55, %v280_v2  ;;  %v144_v59 = vmul.f32 %v127_v55, %v284_v4 }
 0x1be   :  { %155 = vst [vmem:[#allocation7 + $0x20] sm:$0xff] %v147_v56  ;;  %156 = vst [vmem:[#allocation7 + $0x28] sm:$0xff] %v148_v57 }
 0x1bf   :  { %151 = vst [vmem:[#allocation7] sm:$0xff] %v143_v58  ;;  %152 = vst [vmem:[#allocation7 + $0x8] sm:$0xff] %v144_v59  ;;  %v131_v60 = vpop.permute.xlu1 %130 }
 0x1c0   :  { %v145_v61 = vmul.f32 %v131_v60, %v292_v8  ;;  %v146_v62 = vmul.f32 %v131_v60, %v294_v9 }
 0x1c2   :  { %153 = vst [vmem:[#allocation7 + $0x10] sm:$0xff] %v145_v61  ;;  %154 = vst [vmem:[#allocation7 + $0x18] sm:$0xff] %v146_v62 }
 0x1c3   :  { %v142_v63 = vpop.permute.xlu1 %141 }
 0x1c4   :  { %v149_v0 = vmul.f32 %v142_v63, %v286_v5  ;;  %v150_v1 = vmul.f32 %v142_v63, %v288_v6 }
 0x1c6   :  { %157 = vst [vmem:[#allocation7 + $0x30] sm:$0xff] %v149_v0  ;;  %158 = vst [vmem:[#allocation7 + $0x38] sm:$0xff] %v150_v1 }
 0x1c7   :  { %230 = shalt.err (!%p227_p9)
}
 0x1c8   :  { %170 = dma.vmem_to_hbm [thread:$0]  %s165_s23, 1024, %s316_s2, [#allocation4], %s247_s15, %s247_s15, %s248_s16  }
 0x1c9   :  { %243 = dma.done.wait [#allocation4], 1024  }
 0x1ca   :  { %244 = vsyncadd [#allocation4], 4294966272 }
 0x1cb   :  { %174 = vsyncpa [#allocation3], 1 }
 0x1cc   :  { %175 = vsyncpa [#allocation4], 1 }
 0x1cd   :  { %176 = vsyncpa [#allocation5], 1 }

</bundles_post_ra>
